<compile_context>
chip_gen: v7x
topology: tpu7x:2x2x1
jax: 0.10.0
libtpu: 0.0.40
codegen_flags: <defaults>
</compile_context>

<pallas_src>
import functools

import jax
import jax.numpy as jnp
import numpy as np
from jax.experimental import pallas as pl
from jax.experimental.pallas import tpu as pltpu


def _round_up(x, m):
    return (x + m - 1) // m * m


def _pick_epilogue_tile(total, base, cap=2048):
    """Largest multiple of `base` that divides `total` and is <= cap."""
    best = base
    nt = total // base
    for d in range(1, nt + 1):
        if nt % d == 0 and d * base <= cap:
            best = d * base
    return best


# ----------------------------------------------------------------------------
# Kernel A: single-shot matmul per M tile (K-resident bf16 weight, f32 MXU acc)
#           + per-tile per-channel statistics from the f32 accumulator.
# ----------------------------------------------------------------------------
def _matmul_stats_kernel(p_ref, w_ref, y_ref, stats_ref):
    acc = jnp.dot(p_ref[...], w_ref[...], preferred_element_type=jnp.float32)
    y_ref[...] = acc.astype(y_ref.dtype)
    # Per-M-tile partial sums; reduced on the host across M tiles so BatchNorm
    # stats stay global under tiling.  Stats come from the f32 accumulator,
    # NOT from the stored bf16 y.
    s1 = jnp.sum(acc, axis=0, keepdims=True)
    s2 = jnp.sum(acc * acc, axis=0, keepdims=True)
    stats_ref[...] = jnp.concatenate([s1, s2], axis=0)[None]


# ----------------------------------------------------------------------------
# Kernel B: normalize (precomputed scale/bias) + optional residual + ReLU
# ----------------------------------------------------------------------------
def _bn_epilogue_kernel(*refs, add_shortcut, apply_relu):
    if add_shortcut:
        y_ref, scale_ref, bias_ref, sc_ref, o_ref = refs
    else:
        y_ref, scale_ref, bias_ref, o_ref = refs

    out = y_ref[...].astype(jnp.float32) * scale_ref[...] + bias_ref[...]
    if add_shortcut:
        out = out + sc_ref[...].astype(jnp.float32)
    if apply_relu:
        out = jnp.maximum(out, 0.0)
    o_ref[...] = out.astype(o_ref.dtype)


# ----------------------------------------------------------------------------
# Wrapper: conv-as-matmul + batch-stat BN + (residual) + (ReLU)
# ----------------------------------------------------------------------------
def conv_bn_pallas(patches, w_mat, gamma, beta, shortcut=None, relu=False,
                   eps=1e-5, tm_max=512):
    """patches: (M, K), w_mat: (K, Cout) f32, gamma/beta: (Cout,) f32.

    Returns a bf16 (M, Cout) array (BN in training mode, batch statistics).
    """
    M, K = patches.shape
    Cout = w_mat.shape[1]

    Kp = _round_up(K, 128)
    Cp = _round_up(Cout, 128)       # lane-dense, MXU-friendly output width

    # M tiling: as large as reasonable, but keep >= 2 tiles when possible so
    # the "parallel" axis can shard across v7x's two TensorCores.
    tm = min(tm_max, _round_up(M, 128))
    Mp = _round_up(M, tm)
    while Mp // tm < 2 and tm > 128:
        tm //= 2
        Mp = _round_up(M, tm)
    Mt = Mp // tm

    # bf16 MXU inputs (f32 accumulation inside the kernel); zero padding rows /
    # cols contribute nothing to the matmul or the channel statistics.
    p = patches.astype(jnp.bfloat16)
    if (Mp - M) or (Kp - K):
        p = jnp.pad(p, ((0, Mp - M), (0, Kp - K)))
    w = w_mat.astype(jnp.bfloat16)
    if (Kp - K) or (Cp - Cout):
        w = jnp.pad(w, ((0, Kp - K), (0, Cp - Cout)))

    y, stats = pl.pallas_call(
        _matmul_stats_kernel,
        out_shape=(jax.ShapeDtypeStruct((Mp, Cp), jnp.bfloat16),
                   jax.ShapeDtypeStruct((Mt, 2, Cp), jnp.float32)),
        grid_spec=pltpu.PrefetchScalarGridSpec(
            num_scalar_prefetch=0,
            grid=(Mt,),
            in_specs=[pl.BlockSpec((tm, Kp), lambda i: (i, 0)),
                      pl.BlockSpec((Kp, Cp), lambda i: (0, 0))],   # K-resident
            out_specs=[pl.BlockSpec((tm, Cp), lambda i: (i, 0)),
                       pl.BlockSpec((1, 2, Cp), lambda i: (i, 0, 0))]),
        compiler_params=pltpu.CompilerParams(
            dimension_semantics=("parallel",),
            vmem_limit_bytes=48 * 1024 * 1024),
    )(p, w)

    # Fold the batch statistics (true M; padding rows are zero) into a single
    # per-channel scale/bias so the epilogue kernel is one FMA per element.
    ssum = jnp.sum(stats[:, 0, :], axis=0)
    ssq = jnp.sum(stats[:, 1, :], axis=0)
    mean = ssum / M
    var = jnp.maximum(ssq / M - mean * mean, 0.0)   # biased batch variance
    g = jnp.pad(gamma.astype(jnp.float32), (0, Cp - Cout))
    b = jnp.pad(beta.astype(jnp.float32), (0, Cp - Cout))
    scale_vec = g * jax.lax.rsqrt(var + eps)
    bias_vec = b - mean * scale_vec
    scale = scale_vec.reshape(1, Cp)
    bias = bias_vec.reshape(1, Cp)

    # Epilogue is purely memory-bound: use a larger, independently chosen tile.
    tm_ep = _pick_epilogue_tile(Mp, tm, cap=2048)
    Mt_ep = Mp // tm_ep

    inputs = [y, scale, bias]
    in_specs = [pl.BlockSpec((tm_ep, Cp), lambda i: (i, 0)),
                pl.BlockSpec((1, Cp), lambda i: (0, 0)),
                pl.BlockSpec((1, Cp), lambda i: (0, 0))]
    if shortcut is not None:
        sc = shortcut.astype(jnp.bfloat16)
        sc_m, sc_c = sc.shape
        if (Mp - sc_m) or (Cp - sc_c):
            sc = jnp.pad(sc, ((0, Mp - sc_m), (0, Cp - sc_c)))
        inputs.append(sc)
        in_specs.append(pl.BlockSpec((tm_ep, Cp), lambda i: (i, 0)))

    kernel = functools.partial(_bn_epilogue_kernel,
                               add_shortcut=shortcut is not None,
                               apply_relu=relu)
    out = pl.pallas_call(
        kernel,
        out_shape=jax.ShapeDtypeStruct((Mp, Cp), jnp.bfloat16),
        grid_spec=pltpu.PrefetchScalarGridSpec(
            num_scalar_prefetch=0,
            grid=(Mt_ep,),
            in_specs=in_specs,
            out_specs=pl.BlockSpec((tm_ep, Cp), lambda i: (i, 0))),
        compiler_params=pltpu.CompilerParams(
            dimension_semantics=("parallel",),
            vmem_limit_bytes=48 * 1024 * 1024),
    )(*inputs)

    return out[:M, :Cout]


# ----------------------------------------------------------------------------
# Glue: quaternion weight assembly, im2col patch extraction (plain JAX)
# ----------------------------------------------------------------------------
def quat_weight(r, i, j, k):
    """Build the Hamilton-product block weight, OIHW, (4*out_q, 4*in_q, kh, kw)."""
    row_r = jnp.concatenate([r, -i, -j, -k], axis=1)
    row_i = jnp.concatenate([i, r, -k, j], axis=1)
    row_j = jnp.concatenate([j, k, r, -i], axis=1)
    row_k = jnp.concatenate([k, -j, i, r], axis=1)
    return jnp.concatenate([row_r, row_i, row_j, row_k], axis=0)


def conv_w_to_mat(w_oihw):
    """OIHW conv weight -> (KH*KW*Cin, Cout) matmul weight (matches im2col order)."""
    Cout, Cin, KH, KW = w_oihw.shape
    return jnp.transpose(w_oihw, (2, 3, 1, 0)).reshape(KH * KW * Cin, Cout)


def im2col(x_nhwc, ksize, stride, padding):
    N, H, W, C = x_nhwc.shape
    xp = jnp.pad(x_nhwc, ((0, 0), (padding, padding), (padding, padding), (0, 0)))
    Ho = (H + 2 * padding - ksize) // stride + 1
    Wo = (W + 2 * padding - ksize) // stride + 1
    taps = []
    for dh in range(ksize):
        for dw in range(ksize):
            taps.append(xp[:, dh:dh + Ho * stride:stride, dw:dw + Wo * stride:stride, :])
    p = jnp.stack(taps, axis=3)  # (N, Ho, Wo, KH*KW, C)
    return p.reshape(N * Ho * Wo, ksize * ksize * C), (N, Ho, Wo)


# ----------------------------------------------------------------------------
# BasicBlock forward (functional)
# ----------------------------------------------------------------------------
def basic_block_forward(x_nchw, params, stride):
    # NHWC, bf16 activations end-to-end (BN stats stay f32 inside the kernels).
    x = jnp.transpose(x_nchw, (0, 2, 3, 1)).astype(jnp.bfloat16)
    N, H, W, Cin = x.shape

    w1 = quat_weight(*params["conv1"])
    planes = w1.shape[0]

    # conv1 (3x3, stride, pad=1) + bn1 + relu
    p1, (_, Ho, Wo) = im2col(x, 3, stride, 1)
    y1 = conv_bn_pallas(p1, conv_w_to_mat(w1), *params["bn1"], relu=True)
    y1_img = y1.reshape(N, Ho, Wo, planes)

    # shortcut branch
    if "conv_sc" in params:
        wsc = quat_weight(*params["conv_sc"])
        psc, _ = im2col(x, 1, stride, 0)
        sc = conv_bn_pallas(psc, conv_w_to_mat(wsc), *params["bn_sc"], relu=False)
    else:
        sc = x.reshape(N * H * W, Cin)  # identity shortcut

    # conv2 (3x3, stride=1, pad=1) + bn2 + residual add + relu
    w2 = quat_weight(*params["conv2"])
    p2, _ = im2col(y1_img, 3, 1, 1)
    out = conv_bn_pallas(p2, conv_w_to_mat(w2), *params["bn2"],
                         shortcut=sc, relu=True)

    out = out.reshape(N, Ho, Wo, planes).astype(jnp.float32)
    return jnp.transpose(out, (0, 3, 1, 2))  # NCHW


# ----------------------------------------------------------------------------
# Deterministic parameter init
# ----------------------------------------------------------------------------
def quat_conv_init(key, in_q, out_q, k):
    ks = jax.random.split(key, 4)
    scale = 1.0 / np.sqrt(4 * in_q * k * k)
    return tuple(
        jax.random.normal(kk, (out_q, in_q, k, k), jnp.float32) * scale for kk in ks
    )


def bn_init(key, c):
    k1, k2 = jax.random.split(key)
    gamma = 1.0 + 0.1 * jax.random.normal(k1, (c,), jnp.float32)
    beta = 0.1 * jax.random.normal(k2, (c,), jnp.float32)
    return gamma, beta


def init_params(key, in_planes, planes, stride, expansion=1):
    ks = jax.random.split(key, 6)
    params = {
        "conv1": quat_conv_init(ks[0], in_planes // 4, planes // 4, 3),
        "bn1": bn_init(ks[1], planes),
        "conv2": quat_conv_init(ks[2], planes // 4, planes // 4, 3),
        "bn2": bn_init(ks[3], planes),
    }
    if stride != 1 or in_planes != expansion * planes:
        params["conv_sc"] = quat_conv_init(ks[4], in_planes // 4, expansion * planes // 4, 1)
        params["bn_sc"] = bn_init(ks[5], expansion * planes)
    return params


# ----------------------------------------------------------------------------
# Pure-JAX f32 reference (for correctness check)
# ----------------------------------------------------------------------------
def ref_forward(x, params, stride, eps=1e-5):
    def conv(z, w, s, pad):
        return jax.lax.conv_general_dilated(
            z, w, (s, s), ((pad, pad), (pad, pad)),
            dimension_numbers=("NCHW", "OIHW", "NCHW"))

    def bn(y, gamma, beta):
        mean = jnp.mean(y, axis=(0, 2, 3), keepdims=True)
        var = jnp.mean(jnp.square(y - mean), axis=(0, 2, 3), keepdims=True)
        return ((y - mean) * jax.lax.rsqrt(var + eps)
                * gamma[None, :, None, None] + beta[None, :, None, None])

    w1 = quat_weight(*params["conv1"])
    w2 = quat_weight(*params["conv2"])
    out = jax.nn.relu(bn(conv(x, w1, stride, 1), *params["bn1"]))
    out = bn(conv(out, w2, 1, 1), *params["bn2"])
    if "conv_sc" in params:
        sc = bn(conv(x, quat_weight(*params["conv_sc"]), stride, 0), *params["bn_sc"])
    else:
        sc = x
    return jax.nn.relu(out + sc)


# ----------------------------------------------------------------------------
if __name__ == "__main__":
    key = jax.random.PRNGKey(0)
    k_x, k_p = jax.random.split(key)

    # BasicBlock(in_planes=16, planes=32, stride=2) — channels divisible by 4
    # (quaternion); stride=2 exercises the projection shortcut.
    N, in_planes, H, W = 2, 16, 16, 16
    planes, stride = 32, 2

    x = jax.random.normal(k_x, (N, in_planes, H, W), jnp.float32)
    params = init_params(k_p, in_planes, planes, stride)

    out = basic_block_forward(x, params, stride)
    out = jax.block_until_ready(out)

    ref = jax.block_until_ready(ref_forward(x, params, stride))
    # bf16 MXU inputs AND bf16 activations/intermediates (per the perf review);
    # BN stats stay f32 in-kernel, so only per-element quantization error remains.
    np.testing.assert_allclose(np.asarray(out), np.asarray(ref), rtol=2e-2, atol=3e-2)

    print("KERNEL_OK")
</pallas_src>

<mosaic_0001>
module attributes {stable_mosaic.version = 11 : i64} {
  func.func @_matmul_stats_kernel(%arg0: i32, %arg1: memref<128x256xbf16, #tpu.memory_space<vmem>>, %arg2: memref<256x128xbf16, #tpu.memory_space<vmem>>, %arg3: memref<128x128xbf16, #tpu.memory_space<vmem>>, %arg4: memref<1x2x128xf32, #tpu.memory_space<vmem>>) attributes {dimension_semantics = [#tpu.dimension_semantics<parallel>], iteration_bounds = array<i64: 1>, scalar_prefetch = 0 : i64, scratch_operands = 0 : i64, tpu.core_type = #tpu.core_type<tc>, window_params = [{transform_indices = @transform_0, window_bounds = array<i64: 128, 256>}, {pipeline_mode = #tpu.pipeline_mode<synchronous>, transform_indices = @transform_1, window_bounds = array<i64: 256, 128>}, {transform_indices = @transform_2, window_bounds = array<i64: 128, 128>}, {transform_indices = @transform_3, window_bounds = array<i64: 1, 2, 128>}]} {
    %c0 = arith.constant 0 : index
    %c0_0 = arith.constant 0 : index
    %0 = vector.load %arg1[%c0, %c0_0] : memref<128x256xbf16, #tpu.memory_space<vmem>>, vector<128x256xbf16>
    %c0_1 = arith.constant 0 : index
    %c0_2 = arith.constant 0 : index
    %1 = vector.load %arg2[%c0_1, %c0_2] : memref<256x128xbf16, #tpu.memory_space<vmem>>, vector<256x128xbf16>
    %cst = arith.constant dense<0.000000e+00> : vector<128x128xf32>
    %2 = tpu.matmul %0, %1, %cst {dimension_numbers = #tpu.dot_dimension_numbers<[1], [0], [0], [1], [0, 0, 1, 1], [], []>} : vector<128x256xbf16>, vector<256x128xbf16>, vector<128x128xf32> -> vector<128x128xf32>
    %3 = arith.truncf %2 : vector<128x128xf32> to vector<128x128xbf16>
    %c0_3 = arith.constant 0 : index
    %c0_4 = arith.constant 0 : index
    %4 = vector.load %arg3[%c0_3, %c0_4] : memref<128x128xbf16, #tpu.memory_space<vmem>>, vector<128x128xbf16>
    tpu.vector_store %arg3[%c0_3, %c0_4], %3 {strides = array<i32>} : memref<128x128xbf16, #tpu.memory_space<vmem>>, vector<128x128xbf16>,
    %cst_5 = arith.constant dense<0.000000e+00> : vector<128xf32>
    %5 = vector.multi_reduction <add>, %2, %cst_5 [0] : vector<128x128xf32> to vector<128xf32>
    %6 = vector.shape_cast %5 : vector<128xf32> to vector<1x128xf32>
    %7 = arith.mulf %2, %2 : vector<128x128xf32>
    %cst_6 = arith.constant dense<0.000000e+00> : vector<128xf32>
    %8 = vector.multi_reduction <add>, %7, %cst_6 [0] : vector<128x128xf32> to vector<128xf32>
    %9 = vector.shape_cast %8 : vector<128xf32> to vector<1x128xf32>
    %10 = tpu.concatenate %6, %9 in 0 : vector<1x128xf32>, vector<1x128xf32> -> vector<2x128xf32>
    %11 = vector.shape_cast %10 : vector<2x128xf32> to vector<1x2x128xf32>
    %c0_7 = arith.constant 0 : index
    %c0_8 = arith.constant 0 : index
    %c0_9 = arith.constant 0 : index
    %12 = vector.load %arg4[%c0_7, %c0_8, %c0_9] : memref<1x2x128xf32, #tpu.memory_space<vmem>>, vector<1x2x128xf32>
    tpu.vector_store %arg4[%c0_7, %c0_8, %c0_9], %11 {strides = array<i32>} : memref<1x2x128xf32, #tpu.memory_space<vmem>>, vector<1x2x128xf32>,
    return
  }
  func.func @transform_0(%arg0: i32) -> (i32, i32) {
    %c0_i32 = arith.constant 0 : i32
    %c0_i32_0 = arith.constant 0 : i32
    return %arg0, %c0_i32 : i32, i32
  }
  func.func @transform_1(%arg0: i32) -> (i32, i32) {
    %c0_i32 = arith.constant 0 : i32
    %c0_i32_0 = arith.constant 0 : i32
    %c0_i32_1 = arith.constant 0 : i32
    return %c0_i32, %c0_i32_0 : i32, i32
  }
  func.func @transform_2(%arg0: i32) -> (i32, i32) {
    %c0_i32 = arith.constant 0 : i32
    %c0_i32_0 = arith.constant 0 : i32
    return %arg0, %c0_i32 : i32, i32
  }
  func.func @transform_3(%arg0: i32) -> (i32, i32, i32) {
    %c0_i32 = arith.constant 0 : i32
    %c0_i32_0 = arith.constant 0 : i32
    %c0_i32_1 = arith.constant 0 : i32
    return %arg0, %c0_i32, %c0_i32_0 : i32, i32, i32
  }
}

</mosaic_0001>

<bundles_post_ra>
// kernel: tpu_custom_call.1
= control target key start
LH: loop header
LB: loop body
LE: loop exit
PB: predicated region body
PF: predicated region fallthrough
CT: control target
= control target key end

     0   :  { %9 = vsyncpa [#allocation3], 0  ;;  %s985_s0 = inlined_call_operand.hbm [shape: bf16[128,256], index: 0, kind: input, shape index: {}]   ;;  %s986_s1 = inlined_call_operand.hbm [shape: bf16[256,128], index: 1, kind: input, shape index: {}]   ;;  %s987_s2 = inlined_call_operand.hbm [shape: bf16[128,128], index: 2, kind: output, shape index: {0}]   ;;  %s988_s3 = inlined_call_operand.hbm [shape: f32[1,2,128], index: 3, kind: output, shape index: {1}]  }
   0x1   :  { %10 = vsyncpa [#allocation6], 0 }
   0x2   :  { %11 = vsyncpa [#allocation4], 0 }
   0x3   :  { %12 = vsyncpa [#allocation9], 0  ;;  %s873_s12 = smov [#allocation2]   ;;  %s777_s16 = scalar_lea.hbm %s985_s0, 2048 }
   0x4   :  { %s18_s13 = sshll.u32 %s873_s12, 4  ;;  %p778_p0 = scmp.ne.s32.totalorder %s985_s0, %s777_s16  ;;  %s19_s13 = int_to_ptr.vmem [resolvable:$true] %s18_s13 }
   0x5   :  { %p781_p1 = scmp.lt.u32.totalorder %s777_s16, %s985_s0 }
   0x7   :  { %p783_p2 = pnand %p781_p1, %p778_p0 }
   0x9   :  { %786 = shalt.err (!%p783_p2)
}
   0xa   :  { %s787_s21 = scalar_lea.vmem %s19_s13, 2048  ;;  %p792_p4 = scmp.lt.s32.totalorder %s19_s13, %s19_s13 }
   0xb   :  { %p788_p3 = scmp.ne.s32.totalorder %s19_s13, %s787_s21  ;;  %p793_p5 = scmp.lt.s32.totalorder %s787_s21, %s787_s21 }
   0xd   :  { %p794_p6 = por %p793_p5, %p792_p4 }
   0xf   :  { %p795_p7 = pnand %p794_p6, %p788_p3 }
  0x11   :  { %798 = shalt.err (!%p795_p7)
}
  0x12   :  { %s874_s22 = smov 128   ;;  %s875_s23 = smov 8  }
  0x13   :  { %24 = dma.hbm_to_vmem [thread:$0]  %s985_s0, 2048, %s19_s13, [#allocation3], %s874_s22, %s874_s22, %s875_s23  }
  0x14   :  { %s876_s26 = smov [#allocation5]   ;;  %s799_s30 = scalar_lea.hbm %s986_s1, 2048 }
  0x15   :  { %s30_s27 = sshll.u32 %s876_s26, 4  ;;  %p800_p8 = scmp.ne.s32.totalorder %s986_s1, %s799_s30  ;;  %s31_s27 = int_to_ptr.vmem [resolvable:$true] %s30_s27 }
  0x16   :  { %p803_p9 = scmp.lt.u32.totalorder %s799_s30, %s986_s1 }
  0x18   :  { %p805_p10 = pnand %p803_p9, %p800_p8 }
  0x1a   :  { %808 = shalt.err (!%p805_p10)
}
  0x1b   :  { %s809_s8 = scalar_lea.vmem %s31_s27, 2048  ;;  %p814_p12 = scmp.lt.s32.totalorder %s31_s27, %s31_s27 }
  0x1c   :  { %p810_p11 = scmp.ne.s32.totalorder %s31_s27, %s809_s8  ;;  %p815_p13 = scmp.lt.s32.totalorder %s809_s8, %s809_s8 }
  0x1e   :  { %p816_p0 = por %p815_p13, %p814_p12 }
  0x20   :  { %p817_p1 = pnand %p816_p0, %p810_p11 }
  0x22   :  { %820 = shalt.err (!%p817_p1)
}
  0x23   :  { %s877_s0 = smov 64   ;;  %s878_s9 = smov 4  }
  0x24   :  { %36 = dma.hbm_to_vmem [thread:$0]  %s986_s1, 2048, %s31_s27, [#allocation6], %s877_s0, %s877_s0, %s878_s9  }
  0x25   :  { %865 = dma.done.wait [#allocation3], 2048  }
  0x26   :  { %866 = vsyncadd [#allocation3], 4294965248 }
  0x27   :  { %867 = dma.done.wait [#allocation6], 2048  }
  0x28   :  { %868 = vsyncadd [#allocation6], 4294965248  ;;  %v737_v0 = vld [vmem:[#allocation5 + $0x40] sm:$0xff]   ;;  %v739_v2 = vld [vmem:[#allocation5 + $0x48] sm:$0xff]   ;;  %s879_s1 = smov [#allocation7]  }
  0x29   :  { %v738_v1 = vld [vmem:[#allocation5] sm:$0xff]   ;;  %649 = vmatprep.subr.bf16.mxu0 %v737_v0  ;;  %713 = vmatprep.subr.bf16.mxu1 %v737_v0  ;;  %v740_v3 = vld [vmem:[#allocation5 + $0x8] sm:$0xff]   ;;  %v741_v4 = vld [vmem:[#allocation5 + $0x50] sm:$0xff]   ;;  %s511_s12 = sshll.u32 %s879_s1, 4  ;;  %s512_s12 = int_to_ptr.vmem [resolvable:$true] %s511_s12 }
  0x2a   :  { %650 = vmatpush3.bf16.msra.mxu0 %v738_v1  ;;  %721 = vmatpush3.bf16.msra.mxu1 %v738_v1  ;;  %v742_v5 = vld [vmem:[#allocation5 + $0x10] sm:$0xff]   ;;  %v743_v6 = vld [vmem:[#allocation5 + $0x58] sm:$0xff]   ;;  %v745_v8 = vld [vmem:[#allocation5 + $0x60] sm:$0xff]   ;;  %s821_s13 = scalar_lea.vmem %s512_s12, 1024  ;;  %p826_p3 = scmp.lt.s32.totalorder %s512_s12, %s512_s12 }
  0x2b   :  { %651 = vmatprep.subr.bf16.mxu0 %v739_v2  ;;  %714 = vmatprep.subr.bf16.mxu1 %v739_v2  ;;  %v744_v7 = vld [vmem:[#allocation5 + $0x18] sm:$0xff]   ;;  %v746_v9 = vld [vmem:[#allocation5 + $0x20] sm:$0xff]   ;;  %v747_v10 = vld [vmem:[#allocation5 + $0x68] sm:$0xff]   ;;  %p822_p2 = scmp.ne.s32.totalorder %s512_s12, %s821_s13  ;;  %p827_p4 = scmp.lt.s32.totalorder %s821_s13, %s821_s13 }
  0x2c   :  { %v755_v11 = vld [vmem:[#allocation2 + $0x4] ss:$8 sps:$4 sm:$0xff]   ;;  %v749_v14 = vld [vmem:[#allocation5 + $0x70] sm:$0xff]   ;;  %v751_v16 = vld [vmem:[#allocation5 + $0x78] sm:$0xff]  }
  0x2d   :  { %v748_v12 = vld [vmem:[#allocation5 + $0x28] sm:$0xff]   ;;  %300 = vmatprep.mubr.bf16.mxu0 %v755_v11  ;;  %v750_v15 = vld [vmem:[#allocation5 + $0x30] sm:$0xff]   ;;  %v752_v17 = vld [vmem:[#allocation5 + $0x38] sm:$0xff]   ;;  %p828_p5 = por %p827_p4, %p826_p3 }
  0x2e   :  { %652 = vmatpush3.bf16.msra.mxu0 %v740_v3  ;;  %722 = vmatpush3.bf16.msra.mxu1 %v740_v3  ;;  %v761_v13 = vld [vmem:[#allocation2 + $0x44] ss:$8 sps:$4 sm:$0xff]   ;;  %v753_v18 = vld [vmem:[#allocation2] ss:$8 sps:$4 sm:$0xff]   ;;  %v756_v20 = vld [vmem:[#allocation2 + $0x14] ss:$8 sps:$4 sm:$0xff]  }
  0x2f   :  { %653 = vmatprep.subr.bf16.mxu0 %v741_v4  ;;  %715 = vmatprep.subr.bf16.mxu1 %v741_v4  ;;  %v759_v19 = vld [vmem:[#allocation2 + $0x40] ss:$8 sps:$4 sm:$0xff]   ;;  %v765_v21 = vld [vmem:[#allocation2 + $0x54] ss:$8 sps:$4 sm:$0xff]   ;;  %v758_v22 = vld [vmem:[#allocation2 + $0x10] ss:$8 sps:$4 sm:$0xff]   ;;  %p829_p6 = pnand %p828_p5, %p822_p2 }
  0x30   :  { %332 = vmatprep.mubr.bf16.mxu1 %v761_v13  ;;  %v767_v23 = vld [vmem:[#allocation2 + $0x50] ss:$8 sps:$4 sm:$0xff]   ;;  %v762_v24 = vld [vmem:[#allocation2 + $0x24] ss:$8 sps:$4 sm:$0xff]   ;;  %v764_v26 = vld [vmem:[#allocation2 + $0x20] ss:$8 sps:$4 sm:$0xff]  }
  0x31   :  { %v771_v25 = vld [vmem:[#allocation2 + $0x64] ss:$8 sps:$4 sm:$0xff]   ;;  %v773_v27 = vld [vmem:[#allocation2 + $0x60] ss:$8 sps:$4 sm:$0xff]   ;;  %v768_v28 = vld [vmem:[#allocation2 + $0x34] ss:$8 sps:$4 sm:$0xff]  }
  0x32   :  { %654 = vmatpush3.bf16.msra.mxu0 %v742_v5  ;;  %723 = vmatpush3.bf16.msra.mxu1 %v742_v5  ;;  %v774_v29 = vld [vmem:[#allocation2 + $0x74] ss:$8 sps:$4 sm:$0xff]   ;;  %v770_v30 = vld [vmem:[#allocation2 + $0x30] ss:$8 sps:$4 sm:$0xff]  }
  0x33   :  { %655 = vmatprep.subr.bf16.mxu0 %v743_v6  ;;  %716 = vmatprep.subr.bf16.mxu1 %v743_v6  ;;  %v776_v31 = vld [vmem:[#allocation2 + $0x70] ss:$8 sps:$4 sm:$0xff]  }
  0x36   :  { %656 = vmatpush3.bf16.msra.mxu0 %v744_v7  ;;  %724 = vmatpush3.bf16.msra.mxu1 %v744_v7 }
  0x37   :  { %657 = vmatprep.subr.bf16.mxu0 %v745_v8  ;;  %717 = vmatprep.subr.bf16.mxu1 %v745_v8 }
  0x3a   :  { %658 = vmatpush3.bf16.msra.mxu0 %v746_v9  ;;  %725 = vmatpush3.bf16.msra.mxu1 %v746_v9 }
  0x3b   :  { %659 = vmatprep.subr.bf16.mxu0 %v747_v10  ;;  %718 = vmatprep.subr.bf16.mxu1 %v747_v10 }
  0x3e   :  { %660 = vmatpush3.bf16.msra.mxu0 %v748_v12  ;;  %726 = vmatpush3.bf16.msra.mxu1 %v748_v12 }
  0x3f   :  { %661 = vmatprep.subr.bf16.mxu0 %v749_v14  ;;  %719 = vmatprep.subr.bf16.mxu1 %v749_v14 }
  0x42   :  { %662 = vmatpush3.bf16.msra.mxu0 %v750_v15  ;;  %727 = vmatpush3.bf16.msra.mxu1 %v750_v15 }
  0x43   :  { %663 = vmatprep.subr.bf16.mxu0 %v751_v16  ;;  %720 = vmatprep.subr.bf16.mxu1 %v751_v16 }
  0x46   :  { %664 = vmatpush3.bf16.msra.mxu0 %v752_v17  ;;  %728 = vmatpush3.bf16.msra.mxu1 %v752_v17 }
  0x49   :  { %301 = vmatmul.mubr.bf16.vlgmr.msra.gmra.mrb[0].mxu0 %v753_v18  ;;  %333 = vmatmul.mubr.bf16.vlgmr.msra.gmra.mrb[0].mxu1 %v759_v19 }
  0x4a   :  { %308 = vmatprep.mubr.bf16.mxu0 %v756_v20  ;;  %340 = vmatprep.mubr.bf16.mxu1 %v765_v21 }
  0x51   :  { %309 = vmatmul.mubr.bf16.gmra.mrb[4].mxu0 %v758_v22  ;;  %341 = vmatmul.mubr.bf16.gmra.mrb[4].mxu1 %v767_v23 }
  0x52   :  { %316 = vmatprep.mubr.bf16.mxu0 %v762_v24  ;;  %348 = vmatprep.mubr.bf16.mxu1 %v771_v25 }
  0x59   :  { %317 = vmatmul.mubr.bf16.gmra.mrb[8].mxu0 %v764_v26  ;;  %349 = vmatmul.mubr.bf16.gmra.mrb[8].mxu1 %v773_v27 }
  0x5a   :  { %324 = vmatprep.mubr.bf16.mxu0 %v768_v28  ;;  %356 = vmatprep.mubr.bf16.mxu1 %v774_v29 }
  0x61   :  { %325 = vmatmul.mubr.bf16.gmra.mrb[12].mxu0 %v770_v30  ;;  %357 = vmatmul.mubr.bf16.gmra.mrb[12].mxu1 %v776_v31 }
 0x11c   :  { %v665_v32 = vpop.f32.mrb[0].mxu0  ;;  %v689_v33 = vpop.f32.mrb[0].mxu1 }
 0x11d   :  { %v666_v34 = vpop.f32.mrb[1].mxu0  ;;  %v690_v35 = vpop.f32.mrb[1].mxu1 }
 0x11e   :  { %v667_v36 = vadd.f32 %v666_v34, %v665_v32  ;;  %v668_v37 = vpop.f32.mrb[2].mxu0  ;;  %v928_v38 = vadd.f32 %v690_v35, %v689_v33  ;;  %v692_v39 = vpop.f32.mrb[2].mxu1 }
 0x11f   :  { %v669_v40 = vpop.f32.mrb[3].mxu0  ;;  %v693_v41 = vpop.f32.mrb[3].mxu1 }
 0x120   :  { %v670_v42 = vadd.f32 %v669_v40, %v668_v37  ;;  %v930_v43 = vadd.f32 %v693_v41, %v692_v39  ;;  %v466_v44 = vmul.f32 %v667_v36, %v667_v36 }
 0x122   :  { %v605_v45 = vpack.c.bf16 %v670_v42, %v667_v36  ;;  %v445_v46 = vadd.f32 %v670_v42, %v667_v36  ;;  %v467_v47 = vmul.f32 %v670_v42, %v670_v42  ;;  %v625_v48 = vpack.c.bf16 %v930_v43, %v928_v38 }
 0x124   :  { %606 = vst [vmem:[#allocation7] sm:$0xff] %v605_v45   ;;  %v482_v49 = vadd.f32 %v467_v47, %v466_v44  ;;  %v671_v50 = vpop.f32.mrb[4].mxu0  ;;  %645 = vst [vmem:[#allocation7 + $0x20] sm:$0xff] %v625_v48   ;;  %v695_v51 = vpop.f32.mrb[4].mxu1  ;;  %v474_v47 = vmul.f32 %v928_v38, %v928_v38 }
 0x125   :  { %v672_v52 = vpop.f32.mrb[5].mxu0  ;;  %v696_v53 = vpop.f32.mrb[5].mxu1 }
 0x126   :  { %v673_v54 = vadd.f32 %v672_v52, %v671_v50  ;;  %v674_v55 = vpop.f32.mrb[6].mxu0  ;;  %v934_v56 = vadd.f32 %v696_v53, %v695_v51  ;;  %v698_v57 = vpop.f32.mrb[6].mxu1  ;;  %v475_v50 = vmul.f32 %v930_v43, %v930_v43 }
 0x127   :  { %v675_v58 = vpop.f32.mrb[7].mxu0  ;;  %v699_v59 = vpop.f32.mrb[7].mxu1 }
 0x128   :  { %v446_v60 = vadd.f32 %v673_v54, %v445_v46  ;;  %v468_v61 = vmul.f32 %v673_v54, %v673_v54  ;;  %v676_v62 = vadd.f32 %v675_v58, %v674_v55  ;;  %v936_v63 = vadd.f32 %v699_v59, %v698_v57 }
 0x12a   :  { %v483_v0 = vadd.f32 %v482_v49, %v468_v61  ;;  %v610_v1 = vpack.c.bf16 %v676_v62, %v673_v54  ;;  %v447_v2 = vadd.f32 %v676_v62, %v446_v60  ;;  %v469_v3 = vmul.f32 %v676_v62, %v676_v62 }
 0x12b   :  { %v630_v4 = vpack.c.bf16 %v936_v63, %v934_v56 }
 0x12c   :  { %642 = vst [vmem:[#allocation7 + $0x8] sm:$0xff] %v610_v1   ;;  %v484_v5 = vadd.f32 %v483_v0, %v469_v3  ;;  %v677_v6 = vpop.f32.mrb[8].mxu0  ;;  %v701_v7 = vpop.f32.mrb[8].mxu1 }
 0x12d   :  { %v678_v8 = vpop.f32.mrb[9].mxu0  ;;  %646 = vst [vmem:[#allocation7 + $0x28] sm:$0xff] %v630_v4   ;;  %v702_v9 = vpop.f32.mrb[9].mxu1 }
 0x12e   :  { %v679_v10 = vadd.f32 %v678_v8, %v677_v6  ;;  %v680_v11 = vpop.f32.mrb[10].mxu0  ;;  %v940_v12 = vadd.f32 %v702_v9, %v701_v7  ;;  %v704_v13 = vpop.f32.mrb[10].mxu1 }
 0x12f   :  { %v681_v14 = vpop.f32.mrb[11].mxu0  ;;  %v705_v15 = vpop.f32.mrb[11].mxu1 }
 0x130   :  { %v448_v16 = vadd.f32 %v679_v10, %v447_v2  ;;  %v470_v17 = vmul.f32 %v679_v10, %v679_v10  ;;  %v682_v18 = vadd.f32 %v681_v14, %v680_v11  ;;  %v706_v19 = vadd.f32 %v705_v15, %v704_v13 }
 0x132   :  { %v485_v20 = vadd.f32 %v484_v5, %v470_v17  ;;  %v615_v21 = vpack.c.bf16 %v682_v18, %v679_v10  ;;  %v449_v22 = vadd.f32 %v682_v18, %v448_v16  ;;  %v471_v23 = vmul.f32 %v682_v18, %v682_v18 }
 0x133   :  { %v635_v24 = vpack.c.bf16 %v706_v19, %v940_v12 }
 0x134   :  { %643 = vst [vmem:[#allocation7 + $0x10] sm:$0xff] %v615_v21   ;;  %v486_v25 = vadd.f32 %v485_v20, %v471_v23  ;;  %v683_v26 = vpop.f32.mrb[12].mxu0  ;;  %v707_v27 = vpop.f32.mrb[12].mxu1 }
 0x135   :  { %v684_v28 = vpop.f32.mrb[13].mxu0  ;;  %647 = vst [vmem:[#allocation7 + $0x30] sm:$0xff] %v635_v24   ;;  %v708_v29 = vpop.f32.mrb[13].mxu1 }
 0x136   :  { %v685_v30 = vadd.f32 %v684_v28, %v683_v26  ;;  %v686_v31 = vpop.f32.mrb[14].mxu0  ;;  %v709_v32 = vadd.f32 %v708_v29, %v707_v27  ;;  %v710_v33 = vpop.f32.mrb[14].mxu1 }
 0x137   :  { %v687_v34 = vpop.f32.mrb[15].mxu0  ;;  %v711_v35 = vpop.f32.mrb[15].mxu1 }
 0x138   :  { %v450_v36 = vadd.f32 %v685_v30, %v449_v22  ;;  %v472_v37 = vmul.f32 %v685_v30, %v685_v30  ;;  %v688_v39 = vadd.f32 %v687_v34, %v686_v31  ;;  %v712_v40 = vadd.f32 %v711_v35, %v710_v33 }
 0x13a   :  { %v487_v41 = vadd.f32 %v486_v25, %v472_v37  ;;  %v620_v42 = vpack.c.bf16 %v688_v39, %v685_v30  ;;  %v451_v44 = vadd.f32 %v688_v39, %v450_v36  ;;  %v473_v45 = vmul.f32 %v688_v39, %v688_v39 }
 0x13b   :  { %v640_v46 = vpack.c.bf16 %v712_v40, %v709_v32 }
 0x13c   :  { %644 = vst [vmem:[#allocation7 + $0x18] sm:$0xff] %v620_v42   ;;  %v452_v48 = vadd.f32 %v928_v38, %v451_v44  ;;  %v488_v49 = vadd.f32 %v487_v41, %v473_v45 }
 0x13d   :  { %648 = vst [vmem:[#allocation7 + $0x38] sm:$0xff] %v640_v46  }
 0x13e   :  { %v453_v51 = vadd.f32 %v930_v43, %v452_v48  ;;  %v489_v52 = vadd.f32 %v488_v49, %v474_v47 }
 0x13f   :  { %832 = shalt.err (!%p829_p6)
}
 0x140   :  { %s833_s16 = scalar_lea.hbm %s987_s2, 1024 }
 0x141   :  { %p834_p7 = scmp.ne.s32.totalorder %s987_s2, %s833_s16  ;;  %p837_p8 = scmp.lt.u32.totalorder %s833_s16, %s987_s2 }
 0x143   :  { %p839_p9 = pnand %p837_p8, %p834_p7 }
 0x145   :  { %842 = shalt.err (!%p839_p9)
}
 0x146   :  { %517 = dma.vmem_to_hbm [thread:$0]  %s512_s12, 1024, %s987_s2, [#allocation4], %s877_s0, %s877_s0, %s878_s9   ;;  %v476_v38 = vmul.f32 %v934_v56, %v934_v56  ;;  %v490_v43 = vadd.f32 %v489_v52, %v475_v50  ;;  %v454_v53 = vadd.f32 %v934_v56, %v453_v51  ;;  %v477_v54 = vmul.f32 %v936_v63, %v936_v63 }
 0x147   :  { %v478_v59 = vmul.f32 %v940_v12, %v940_v12  ;;  %v479_v0 = vmul.f32 %v706_v19, %v706_v19  ;;  %v480_v1 = vmul.f32 %v709_v32, %v709_v32  ;;  %v481_v5 = vmul.f32 %v712_v40, %v712_v40  ;;  %s880_s2 = smov [#allocation8]  }
 0x148   :  { %v455_v55 = vadd.f32 %v936_v63, %v454_v53  ;;  %v491_v57 = vadd.f32 %v490_v43, %v476_v38  ;;  %s524_s23 = sshll.u32 %s880_s2, 4  ;;  %vm503_vm0 = vcmask 1040384   ;;  %s525_s23 = int_to_ptr.vmem [resolvable:$true] %s524_s23 }
 0x149   :  { %s843_s24 = scalar_lea.vmem %s525_s23, 32  ;;  %p848_p11 = scmp.lt.s32.totalorder %s525_s23, %s525_s23 }
 0x14a   :  { %v456_v58 = vadd.f32 %v940_v12, %v455_v55  ;;  %v492_v60 = vadd.f32 %v491_v57, %v477_v54  ;;  %p844_p10 = scmp.ne.s32.totalorder %s525_s23, %s843_s24  ;;  %p849_p12 = scmp.lt.s32.totalorder %s843_s24, %s843_s24 }
 0x14c   :  { %v493_v61 = vadd.f32 %v492_v60, %v478_v59  ;;  %v457_v62 = vadd.f32 %v706_v19, %v456_v58  ;;  %p850_p13 = por %p849_p12, %p848_p11 }
 0x14e   :  { %v494_v2 = vadd.f32 %v493_v61, %v479_v0  ;;  %v458_v3 = vadd.f32 %v709_v32, %v457_v62  ;;  %p851_p0 = pnand %p850_p13, %p844_p10 }
 0x150   :  { %v495_v4 = vadd.f32 %v494_v2, %v480_v1  ;;  %v459_v56 = vadd.f32 %v712_v40, %v458_v3 }
 0x152   :  { %v460_v6 = vrot.slane %v459_v56, 4  ;;  %v496_v7 = vadd.f32 %v495_v4, %v481_v5 }
 0x154   :  { %v461_v8 = vadd.f32 %v460_v6, %v459_v56  ;;  %v497_v63 = vrot.slane %v496_v7, 4 }
 0x156   :  { %v462_v9 = vrot.slane %v461_v8, 2  ;;  %v498_v10 = vadd.f32 %v497_v63, %v496_v7 }
 0x158   :  { %v463_v11 = vadd.f32 %v462_v9, %v461_v8  ;;  %v499_v13 = vrot.slane %v498_v10, 2 }
 0x15a   :  { %v464_v14 = vrot.slane %v463_v11, 1  ;;  %v500_v12 = vadd.f32 %v499_v13, %v498_v10 }
 0x15c   :  { %v501_v15 = vrot.slane %v500_v12, 1  ;;  %v465_v16 = vadd.f32 %v464_v14, %v463_v11 }
 0x15e   :  { %v502_v17 = vadd.f32 %v501_v15, %v500_v12 }
 0x160   :  { %v504_v18 = vsel %vm503_vm0, %v465_v16, %v502_v17 }
 0x161   :  { %505 = vst [vmem:[#allocation8] sm:$0x3] %v504_v18 }
 0x162   :  { %854 = shalt.err (!%p851_p0)
}
 0x163   :  { %s855_s27 = scalar_lea.hbm %s988_s3, 32 }
 0x164   :  { %p856_p1 = scmp.ne.s32.totalorder %s988_s3, %s855_s27  ;;  %p859_p2 = scmp.lt.u32.totalorder %s855_s27, %s988_s3 }
 0x166   :  { %p861_p3 = pnand %p859_p2, %p856_p1 }
 0x168   :  { %864 = shalt.err (!%p861_p3)
}
 0x169   :  { %527 = dma.vmem_to_hbm [thread:$0]  %s525_s23, 32, %s988_s3, [#allocation9]  }
 0x16a   :  { %869 = dma.done.wait [#allocation4], 1024  }
 0x16b   :  { %870 = vsyncadd [#allocation4], 4294966272 }
 0x16c   :  { %871 = dma.done.wait [#allocation9], 32  }
 0x16d   :  { %872 = vsyncadd [#allocation9], 4294967264 }
 0x16e   :  { %534 = vsyncpa [#allocation3], 1 }
 0x16f   :  { %535 = vsyncpa [#allocation6], 1 }
 0x170   :  { %536 = vsyncpa [#allocation4], 1 }
 0x171   :  { %537 = vsyncpa [#allocation9], 1 }

</bundles_post_ra>
